<compile_context>
chip_gen: v7x
topology: tpu7x:2x2x1
jax: 0.10.0
libtpu: 0.0.40
codegen_flags: <defaults>
</compile_context>

<pallas_src>
import jax
import jax.numpy as jnp
from jax.experimental import pallas as pl
from jax.experimental.pallas import tpu as pltpu

IN_F, H1, H2, OUT_F = 10, 32, 32, 1
LANES = 128

# Row offsets inside the packed parameter slab (all 8-sublane aligned).
R_W1, R_W2, R_B1, R_B2, R_W3, R_B3 = 0, 128, 256, 264, 272, 280
SLAB_ROWS = 288  # multiple of 8


def _round_up(n, m):
    return ((n + m - 1) // m) * m


def mlp_kernel(x_ref, p_ref, o_ref):
    x = x_ref[...]                                   # (tm, 128); lanes >= IN_F are zero
    w1 = p_ref[R_W1:R_W1 + LANES, :]                 # (128, 128); real W1 in [0:10, 0:32]
    w2 = p_ref[R_W2:R_W2 + LANES, :]                 # (128, 128); real W2 in [0:32, 0:32]
    b1 = p_ref[R_B1:R_B1 + 1, :]                     # (1, 128); zeros past lane 31
    b2 = p_ref[R_B2:R_B2 + 1, :]                     # (1, 128); zeros past lane 31
    w3 = p_ref[R_W3:R_W3 + 1, :]                     # (1, 128); w3^T in lanes [0:32]
    b3 = p_ref[R_B3:R_B3 + 1, :]                     # (1, 128); b3 replicated on all lanes

    # fc1 + ReLU (padded lanes stay exactly 0 through the ReLU)
    h = jnp.maximum(jnp.dot(x, w1, preferred_element_type=jnp.float32) + b1, 0.0)
    # fc2 + ReLU
    h = jnp.maximum(jnp.dot(h, w2, preferred_element_type=jnp.float32) + b2, 0.0)
    # fc3 (K=32, N=1): VPU multiply + cross-lane reduce instead of an MXU matmul
    y = jnp.sum(h * w3, axis=-1, keepdims=True)      # (tm, 1)
    # Lane-dense (unmasked) store: replicate result across all 128 lanes, fuse bias add.
    o_ref[...] = (jnp.broadcast_to(y, o_ref.shape) + b3).astype(o_ref.dtype)


def pack_params(params):
    """Pack (w1, b1, w2, b2, w3, b3) into a single (SLAB_ROWS, 128) f32 slab."""
    w1, b1, w2, b2, w3, b3 = params
    slab = jnp.zeros((SLAB_ROWS, LANES), jnp.float32)
    slab = slab.at[R_W1:R_W1 + IN_F, :H1].set(w1)            # (10, 32)
    slab = slab.at[R_W2:R_W2 + H1, :H2].set(w2)              # (32, 32)
    slab = slab.at[R_B1, :H1].set(b1.reshape(-1))
    slab = slab.at[R_B2, :H2].set(b2.reshape(-1))
    slab = slab.at[R_W3, :H2].set(w3.reshape(-1))            # w3 (32, 1) -> one row
    slab = slab.at[R_B3, :].set(b3.reshape(()))              # scalar b3 replicated on lanes
    return slab


def cnn_forward(x, slab, *, tm=None):
    """x: (B, IN_F) f32, slab: packed params. Returns (B, OUT_F) f32."""
    B = x.shape[0]
    if tm is None:
        # Biggest sensible batch tile (amortizes per-step overhead) without overshooting
        # tiny batches; always a multiple of 8 sublanes.
        tm = min(512, _round_up(B, 8))
    Bp = _round_up(B, tm)
    # Layout plumbing only: lane-dense, tile-padded input slab.
    xp = jnp.zeros((Bp, LANES), jnp.float32).at[:B, :IN_F].set(x)

    out = pl.pallas_call(
        mlp_kernel,
        out_shape=jax.ShapeDtypeStruct((Bp, LANES), jnp.float32),
        grid_spec=pltpu.PrefetchScalarGridSpec(
            num_scalar_prefetch=0,
            grid=(Bp // tm,),
            in_specs=[
                pl.BlockSpec((tm, LANES), lambda i: (i, 0)),          # x tile per grid step
                pl.BlockSpec((SLAB_ROWS, LANES), lambda i: (0, 0)),   # weights stay resident
            ],
            out_specs=pl.BlockSpec((tm, LANES), lambda i: (i, 0)),
        ),
        compiler_params=pltpu.CompilerParams(
            dimension_semantics=("parallel",)),  # batch tiles shard across v7x's 2 TCs
    )(xp, slab)
    return out[:B, :OUT_F]


def init_params(key):
    # Mimics torch.nn.Linear default init (U[-1/sqrt(fan_in), 1/sqrt(fan_in)]);
    # weights stored transposed vs torch so y = x @ W + b.
    def linear(key, fan_in, fan_out):
        kw, kb = jax.random.split(key)
        bound = 1.0 / jnp.sqrt(fan_in)
        w = jax.random.uniform(kw, (fan_in, fan_out), jnp.float32, -bound, bound)
        b = jax.random.uniform(kb, (1, fan_out), jnp.float32, -bound, bound)
        return w, b

    k1, k2, k3 = jax.random.split(key, 3)
    w1, b1 = linear(k1, IN_F, H1)
    w2, b2 = linear(k2, H1, H2)
    w3, b3 = linear(k3, H2, OUT_F)
    return (w1, b1, w2, b2, w3, b3)


def reference(x, params):
    w1, b1, w2, b2, w3, b3 = params
    h = jnp.maximum(x @ w1 + b1, 0.0)
    h = jnp.maximum(h @ w2 + b2, 0.0)
    return h @ w3 + b3


if __name__ == "__main__":
    key = jax.random.PRNGKey(0)
    kx, kp = jax.random.split(key)
    B = 8
    x = jax.random.normal(kx, (B, IN_F), jnp.float32)
    params = init_params(kp)
    slab = pack_params(params)

    out = cnn_forward(x, slab)
    out = jax.block_until_ready(out)

    ref = reference(x, params)
    assert out.shape == (B, OUT_F)
    assert jnp.allclose(out, ref, atol=1e-5, rtol=1e-5)
    print("KERNEL_OK")
</pallas_src>

<mosaic_0001>
module attributes {stable_mosaic.version = 11 : i64} {
  func.func @mlp_kernel(%arg0: i32, %arg1: memref<8x128xf32, #tpu.memory_space<vmem>>, %arg2: memref<288x128xf32, #tpu.memory_space<vmem>>, %arg3: memref<8x128xf32, #tpu.memory_space<vmem>>) attributes {dimension_semantics = [#tpu.dimension_semantics<parallel>], iteration_bounds = array<i64: 1>, scalar_prefetch = 0 : i64, scratch_operands = 0 : i64, tpu.core_type = #tpu.core_type<tc>, window_params = [{transform_indices = @transform_0, window_bounds = array<i64: 8, 128>}, {pipeline_mode = #tpu.pipeline_mode<synchronous>, transform_indices = @transform_1, window_bounds = array<i64: 288, 128>}, {transform_indices = @transform_2, window_bounds = array<i64: 8, 128>}]} {
    %c0 = arith.constant 0 : index
    %c0_0 = arith.constant 0 : index
    %0 = vector.load %arg1[%c0, %c0_0] : memref<8x128xf32, #tpu.memory_space<vmem>>, vector<8x128xf32>
    %c0_1 = arith.constant 0 : index
    %c0_2 = arith.constant 0 : index
    %1 = vector.load %arg2[%c0_1, %c0_2] : memref<288x128xf32, #tpu.memory_space<vmem>>, vector<128x128xf32>
    %c128 = arith.constant 128 : index
    %c0_3 = arith.constant 0 : index
    %2 = vector.load %arg2[%c128, %c0_3] : memref<288x128xf32, #tpu.memory_space<vmem>>, vector<128x128xf32>
    %c256 = arith.constant 256 : index
    %c0_4 = arith.constant 0 : index
    %3 = vector.load %arg2[%c256, %c0_4] : memref<288x128xf32, #tpu.memory_space<vmem>>, vector<1x128xf32>
    %c264 = arith.constant 264 : index
    %c0_5 = arith.constant 0 : index
    %4 = vector.load %arg2[%c264, %c0_5] : memref<288x128xf32, #tpu.memory_space<vmem>>, vector<1x128xf32>
    %c272 = arith.constant 272 : index
    %c0_6 = arith.constant 0 : index
    %5 = vector.load %arg2[%c272, %c0_6] : memref<288x128xf32, #tpu.memory_space<vmem>>, vector<1x128xf32>
    %c280 = arith.constant 280 : index
    %c0_7 = arith.constant 0 : index
    %6 = vector.load %arg2[%c280, %c0_7] : memref<288x128xf32, #tpu.memory_space<vmem>>, vector<1x128xf32>
    %cst = arith.constant dense<0.000000e+00> : vector<8x128xf32>
    %7 = tpu.matmul %0, %1, %cst {dimension_numbers = #tpu.dot_dimension_numbers<[1], [0], [0], [1], [0, 0, 1, 1], [], []>} : vector<8x128xf32>, vector<128x128xf32>, vector<8x128xf32> -> vector<8x128xf32>
    %8 = vector.broadcast %3 : vector<1x128xf32> to vector<8x128xf32>
    %9 = arith.addf %7, %8 : vector<8x128xf32>
    %cst_8 = arith.constant 0.000000e+00 : f32
    %10 = vector.broadcast %cst_8 : f32 to vector<8x128xf32>
    %11 = arith.maximumf %9, %10 : vector<8x128xf32>
    %cst_9 = arith.constant dense<0.000000e+00> : vector<8x128xf32>
    %12 = tpu.matmul %11, %2, %cst_9 {dimension_numbers = #tpu.dot_dimension_numbers<[1], [0], [0], [1], [0, 0, 1, 1], [], []>} : vector<8x128xf32>, vector<128x128xf32>, vector<8x128xf32> -> vector<8x128xf32>
    %13 = vector.broadcast %4 : vector<1x128xf32> to vector<8x128xf32>
    %14 = arith.addf %12, %13 : vector<8x128xf32>
    %cst_10 = arith.constant 0.000000e+00 : f32
    %15 = vector.broadcast %cst_10 : f32 to vector<8x128xf32>
    %16 = arith.maximumf %14, %15 : vector<8x128xf32>
    %17 = vector.broadcast %5 : vector<1x128xf32> to vector<8x128xf32>
    %18 = arith.mulf %16, %17 : vector<8x128xf32>
    %cst_11 = arith.constant dense<0.000000e+00> : vector<8xf32>
    %19 = vector.multi_reduction <add>, %18, %cst_11 [1] : vector<8x128xf32> to vector<8xf32>
    %20 = vector.shape_cast %19 : vector<8xf32> to vector<8x1xf32>
    %21 = vector.shape_cast %20 : vector<8x1xf32> to vector<8x1xf32>
    %22 = vector.broadcast %21 : vector<8x1xf32> to vector<8x128xf32>
    %23 = vector.broadcast %6 : vector<1x128xf32> to vector<8x128xf32>
    %24 = arith.addf %22, %23 : vector<8x128xf32>
    %c0_12 = arith.constant 0 : index
    %c0_13 = arith.constant 0 : index
    %25 = vector.load %arg3[%c0_12, %c0_13] : memref<8x128xf32, #tpu.memory_space<vmem>>, vector<8x128xf32>
    tpu.vector_store %arg3[%c0_12, %c0_13], %24 {strides = array<i32>} : memref<8x128xf32, #tpu.memory_space<vmem>>, vector<8x128xf32>,
    return
  }
  func.func @transform_0(%arg0: i32) -> (i32, i32) {
    %c0_i32 = arith.constant 0 : i32
    %c0_i32_0 = arith.constant 0 : i32
    return %arg0, %c0_i32 : i32, i32
  }
  func.func @transform_1(%arg0: i32) -> (i32, i32) {
    %c0_i32 = arith.constant 0 : i32
    %c0_i32_0 = arith.constant 0 : i32
    %c0_i32_1 = arith.constant 0 : i32
    return %c0_i32, %c0_i32_0 : i32, i32
  }
  func.func @transform_2(%arg0: i32) -> (i32, i32) {
    %c0_i32 = arith.constant 0 : i32
    %c0_i32_0 = arith.constant 0 : i32
    return %arg0, %c0_i32 : i32, i32
  }
}

</mosaic_0001>

<bundles_post_ra>
// kernel: tpu_custom_call.1
= control target key start
LH: loop header
LB: loop body
LE: loop exit
PB: predicated region body
PF: predicated region fallthrough
CT: control target
= control target key end

     0   :  { %7 = vsyncpa [#allocation3], 0  ;;  %s572_s0 = inlined_call_operand.hbm [shape: f32[8,128], index: 0, kind: input, shape index: {}]   ;;  %s573_s1 = inlined_call_operand.hbm [shape: f32[288,128], index: 1, kind: input, shape index: {}]   ;;  %s574_s2 = inlined_call_operand.hbm [shape: f32[8,128], index: 2, kind: output, shape index: {}]  }
   0x1   :  { %8 = vsyncpa [#allocation6], 0 }
   0x2   :  { %9 = vsyncpa [#allocation4], 0  ;;  %s490_s9 = smov [#allocation2]   ;;  %s491_s11 = smov [#allocation5]  }
   0x3   :  { %s16_s10 = sshll.u32 %s490_s9, 4  ;;  %s25_s12 = sshll.u32 %s491_s11, 4  ;;  %s17_s10 = int_to_ptr.vmem [resolvable:$true] %s16_s10  ;;  %s513_s12 = int_to_ptr.vmem [resolvable:$true] %s25_s12 }
   0x4   :  { %s418_s15 = scalar_lea.hbm %s572_s0, 128 }
   0x5   :  { %p419_p0 = scmp.ne.s32.totalorder %s572_s0, %s418_s15  ;;  %p422_p1 = scmp.lt.u32.totalorder %s418_s15, %s572_s0 }
   0x7   :  { %p424_p2 = pnand %p422_p1, %p419_p0 }
   0x9   :  { %427 = shalt.err (!%p424_p2)
}
   0xa   :  { %s428_s20 = scalar_lea.vmem %s17_s10, 128  ;;  %p433_p4 = scmp.lt.s32.totalorder %s17_s10, %s17_s10 }
   0xb   :  { %p429_p3 = scmp.ne.s32.totalorder %s17_s10, %s428_s20  ;;  %p434_p5 = scmp.lt.s32.totalorder %s428_s20, %s428_s20 }
   0xd   :  { %p435_p6 = por %p434_p5, %p433_p4 }
   0xf   :  { %p436_p7 = pnand %p435_p6, %p429_p3 }
  0x11   :  { %439 = shalt.err (!%p436_p7)
}
  0x12   :  { %19 = dma.hbm_to_vmem [thread:$0]  %s572_s0, 128, %s17_s10, [#allocation3]  }
  0x13   :  { %s440_s25 = scalar_lea.hbm %s573_s1, 4608 }
  0x14   :  { %p441_p8 = scmp.ne.s32.totalorder %s573_s1, %s440_s25  ;;  %p444_p9 = scmp.lt.u32.totalorder %s440_s25, %s573_s1 }
  0x16   :  { %p446_p10 = pnand %p444_p9, %p441_p8 }
  0x18   :  { %449 = shalt.err (!%p446_p10)
}
  0x19   :  { %s450_s30 = scalar_lea.vmem %s513_s12, 4608  ;;  %p455_p12 = scmp.lt.s32.totalorder %s513_s12, %s513_s12 }
  0x1a   :  { %p451_p11 = scmp.ne.s32.totalorder %s513_s12, %s450_s30  ;;  %p456_p13 = scmp.lt.s32.totalorder %s450_s30, %s450_s30 }
  0x1c   :  { %p457_p0 = por %p456_p13, %p455_p12 }
  0x1e   :  { %p458_p1 = pnand %p457_p0, %p451_p11 }
  0x20   :  { %461 = shalt.err (!%p458_p1)
}
  0x21   :  { %s492_s0 = smov 128   ;;  %s493_s3 = smov 8  }
  0x22   :  { %31 = dma.hbm_to_vmem [thread:$0]  %s573_s1, 4608, %s513_s12, [#allocation6], %s492_s0, %s492_s0, %s493_s3  }
  0x23   :  { %484 = dma.done.wait [#allocation3], 128  }
  0x24   :  { %485 = vsyncadd [#allocation3], 4294967168 }
  0x25   :  { %486 = dma.done.wait [#allocation6], 4608  }
  0x26   :  { %487 = vsyncadd [#allocation6], 4294962688  ;;  %v494_v0 = vmov 0.0|0.0   ;;  %vm495_vm0 = vmmov 0   ;;  %v496_v1 = vmov 0.0   ;;  %v39_v2 = vld [vmem:[#allocation5] sm:$0xff] }
  0x27   :  { %362 = vmatprep.subr.bf16.mxu0 %v494_v0  ;;  %324 = vmatprep.mubr.msk.f32.mxu0 %vm495_vm0, %v496_v1  ;;  %v40_v3 = vld [vmem:[#allocation5 + $0x8] sm:$0xff]  ;;  %v41_v4 = vld [vmem:[#allocation5 + $0x10] sm:$0xff]  ;;  %v42_v6 = vld [vmem:[#allocation5 + $0x18] sm:$0xff]  ;;  %s497_s1 = smov [#allocation7]  }
  0x28   :  { %386 = vmatprep.subr.bf16.mxu1 %v494_v0  ;;  %359 = vmatprep.mubr.msk.f32.mxu1 %vm495_vm0, %v496_v1  ;;  %v363_v5 = vpack.c.bf16 %v40_v3, %v39_v2  ;;  %v366_v7 = vpack.c.bf16 %v42_v6, %v41_v4  ;;  %v43_v8 = vld [vmem:[#allocation5 + $0x20] sm:$0xff]  ;;  %v44_v9 = vld [vmem:[#allocation5 + $0x28] sm:$0xff]  ;;  %v57_v12 = vld [vmem:[#allocation5 + $0x90] sm:$0xff]  ;;  %s244_s6 = sshll.u32 %s497_s1, 4  ;;  %s245_s6 = int_to_ptr.vmem [resolvable:$true] %s244_s6 }
  0x29   :  { %v55_v10 = vld [vmem:[#allocation5 + $0x80] sm:$0xff]  ;;  %v56_v11 = vld [vmem:[#allocation5 + $0x88] sm:$0xff]  ;;  %v58_v13 = vld [vmem:[#allocation5 + $0x98] sm:$0xff]  ;;  %v369_v14 = vpack.c.bf16 %v44_v9, %v43_v8  ;;  %s462_s7 = scalar_lea.vmem %s245_s6, 128  ;;  %p467_p3 = scmp.lt.s32.totalorder %s245_s6, %s245_s6 }
  0x2a   :  { %364 = vmatpush3.bf16.msra.mxu0 %v363_v5  ;;  %v387_v15 = vpack.c.bf16 %v56_v11, %v55_v10  ;;  %v45_v16 = vld [vmem:[#allocation5 + $0x30] sm:$0xff]  ;;  %v46_v17 = vld [vmem:[#allocation5 + $0x38] sm:$0xff]  ;;  %v390_v18 = vpack.c.bf16 %v58_v13, %v57_v12  ;;  %v59_v19 = vld [vmem:[#allocation5 + $0xa0] sm:$0xff]  ;;  %p463_p2 = scmp.ne.s32.totalorder %s245_s6, %s462_s7  ;;  %p468_p4 = scmp.lt.s32.totalorder %s462_s7, %s462_s7 }
  0x2b   :  { %365 = vmatprep.subr.bf16.mxu0 %v494_v0  ;;  %v60_v20 = vld [vmem:[#allocation5 + $0xa8] sm:$0xff]  ;;  %v372_v21 = vpack.c.bf16 %v46_v17, %v45_v16  ;;  %v47_v22 = vld [vmem:[#allocation5 + $0x40] sm:$0xff]  ;;  %v61_v25 = vld [vmem:[#allocation5 + $0xb0] sm:$0xff] }
  0x2c   :  { %388 = vmatpush3.bf16.msra.mxu1 %v387_v15  ;;  %v48_v23 = vld [vmem:[#allocation5 + $0x48] sm:$0xff]  ;;  %v393_v24 = vpack.c.bf16 %v60_v20, %v59_v19  ;;  %v62_v26 = vld [vmem:[#allocation5 + $0xb8] sm:$0xff]  ;;  %v49_v28 = vld [vmem:[#allocation5 + $0x50] sm:$0xff]  ;;  %p469_p5 = por %p468_p4, %p467_p3 }
  0x2d   :  { %389 = vmatprep.subr.bf16.mxu1 %v494_v0  ;;  %v375_v27 = vpack.c.bf16 %v48_v23, %v47_v22  ;;  %v50_v29 = vld [vmem:[#allocation5 + $0x58] sm:$0xff]  ;;  %v396_v30 = vpack.c.bf16 %v62_v26, %v61_v25  ;;  %v63_v31 = vld [vmem:[#allocation5 + $0xc0] sm:$0xff]  ;;  %v64_v32 = vld [vmem:[#allocation5 + $0xc8] sm:$0xff] }
  0x2e   :  { %367 = vmatpush3.bf16.msra.mxu0 %v366_v7  ;;  %v378_v33 = vpack.c.bf16 %v50_v29, %v49_v28  ;;  %v51_v34 = vld [vmem:[#allocation5 + $0x60] sm:$0xff]  ;;  %v52_v35 = vld [vmem:[#allocation5 + $0x68] sm:$0xff]  ;;  %v399_v36 = vpack.c.bf16 %v64_v32, %v63_v31  ;;  %v65_v37 = vld [vmem:[#allocation5 + $0xd0] sm:$0xff]  ;;  %p470_p6 = pnand %p469_p5, %p463_p2 }
  0x2f   :  { %368 = vmatprep.subr.bf16.mxu0 %v494_v0  ;;  %v66_v38 = vld [vmem:[#allocation5 + $0xd8] sm:$0xff]  ;;  %v381_v39 = vpack.c.bf16 %v52_v35, %v51_v34  ;;  %v53_v40 = vld [vmem:[#allocation5 + $0x70] sm:$0xff]  ;;  %v67_v43 = vld [vmem:[#allocation5 + $0xe0] sm:$0xff] }
  0x30   :  { %391 = vmatpush3.bf16.msra.mxu1 %v390_v18  ;;  %v54_v41 = vld [vmem:[#allocation5 + $0x78] sm:$0xff]  ;;  %v402_v42 = vpack.c.bf16 %v66_v38, %v65_v37  ;;  %v68_v44 = vld [vmem:[#allocation5 + $0xe8] sm:$0xff]  ;;  %v69_v48 = vld [vmem:[#allocation5 + $0xf0] sm:$0xff] }
  0x31   :  { %392 = vmatprep.subr.bf16.mxu1 %v494_v0  ;;  %v384_v45 = vpack.c.bf16 %v54_v41, %v53_v40  ;;  %v405_v46 = vpack.c.bf16 %v68_v44, %v67_v43  ;;  %v38_v47 = vld [vmem:[#allocation2] sm:$0xff]  ;;  %v254_v51 = vld [vmem:[#allocation5 + $0x100] ss:$0 sm:$0xff]  ;;  %v255_v56 = vld [vmem:[#allocation5 + $0x108] ss:$0 sm:$0xff] }
  0x32   :  { %370 = vmatpush3.bf16.msra.mxu0 %v369_v14  ;;  %v70_v49 = vld [vmem:[#allocation5 + $0xf8] sm:$0xff]  ;;  %v256_v60 = vld [vmem:[#allocation5 + $0x110] ss:$0 sm:$0xff] }
  0x33   :  { %371 = vmatprep.subr.bf16.mxu0 %v494_v0  ;;  %v408_v50 = vpack.c.bf16 %v70_v49, %v69_v48  ;;  %v257_v63 = vld [vmem:[#allocation5 + $0x118] ss:$0 sm:$0xff] }
  0x34   :  { %394 = vmatpush3.bf16.msra.mxu1 %v393_v24 }
  0x35   :  { %395 = vmatprep.subr.bf16.mxu1 %v494_v0 }
  0x36   :  { %373 = vmatpush3.bf16.msra.mxu0 %v372_v21 }
  0x37   :  { %374 = vmatprep.subr.bf16.mxu0 %v494_v0 }
  0x38   :  { %397 = vmatpush3.bf16.msra.mxu1 %v396_v30 }
  0x39   :  { %398 = vmatprep.subr.bf16.mxu1 %v494_v0 }
  0x3a   :  { %376 = vmatpush3.bf16.msra.mxu0 %v375_v27 }
  0x3b   :  { %377 = vmatprep.subr.bf16.mxu0 %v494_v0 }
  0x3c   :  { %400 = vmatpush3.bf16.msra.mxu1 %v399_v36 }
  0x3d   :  { %401 = vmatprep.subr.bf16.mxu1 %v494_v0 }
  0x3e   :  { %379 = vmatpush3.bf16.msra.mxu0 %v378_v33 }
  0x3f   :  { %380 = vmatprep.subr.bf16.mxu0 %v494_v0 }
  0x40   :  { %403 = vmatpush3.bf16.msra.mxu1 %v402_v42 }
  0x41   :  { %404 = vmatprep.subr.bf16.mxu1 %v494_v0 }
  0x42   :  { %382 = vmatpush3.bf16.msra.mxu0 %v381_v39 }
  0x43   :  { %383 = vmatprep.subr.bf16.mxu0 %v494_v0 }
  0x44   :  { %406 = vmatpush3.bf16.msra.mxu1 %v405_v46 }
  0x45   :  { %407 = vmatprep.subr.bf16.mxu1 %v494_v0 }
  0x46   :  { %385 = vmatpush3.bf16.msra.mxu0 %v384_v45 }
  0x48   :  { %409 = vmatpush3.bf16.msra.mxu1 %v408_v50 }
  0x49   :  { %325 = vmatmul.mubr.f32.vlgmr.msra.gmra.mrb[0].mxu0 %v38_v47 }
 0x11c   :  { %v145_v52 = vpop.f32.mrb[0].mxu0 }
 0x11d   :  { %v146_v53 = vadd.f32 %v254_v51, %v145_v52  ;;  %v326_v54 = vpop.f32.mrb[1].mxu0 }
 0x11f   :  { %v149_v55 = vmax.f32 %v146_v53, 0.0 }
 0x121   :  { %360 = vmatmul.mubr.f32.vlgmr.msra.gmra.mrb[0].mxu1 %v149_v55 }
 0x1f4   :  { %v220_v57 = vpop.f32.mrb[0].mxu1 }
 0x1f5   :  { %v221_v58 = vadd.f32 %v255_v56, %v220_v57  ;;  %v361_v59 = vpop.f32.mrb[1].mxu1 }
 0x1f7   :  { %v224_v61 = vmax.f32 %v221_v58, 0.0 }
 0x1f9   :  { %v229_v62 = vmul.f32 %v256_v60, %v224_v61 }
 0x1fb   :  { %230 = vadd.xlane.f32.xlu0 %v229_v62 }
 0x288   :  { %v231_v0 = vpop.xlane.xlu0 %230 }
 0x289   :  { %v236_v1 = vadd.f32 %v257_v63, %v231_v0 }
 0x28b   :  { %237 = vst [vmem:[#allocation7] sm:$0xff] %v236_v1 }
 0x28c   :  { %473 = shalt.err (!%p470_p6)
}
 0x28d   :  { %s474_s10 = scalar_lea.hbm %s574_s2, 128 }
 0x28e   :  { %p475_p7 = scmp.ne.s32.totalorder %s574_s2, %s474_s10  ;;  %p478_p8 = scmp.lt.u32.totalorder %s474_s10, %s574_s2 }
 0x290   :  { %p480_p9 = pnand %p478_p8, %p475_p7 }
 0x292   :  { %483 = shalt.err (!%p480_p9)
}
 0x293   :  { %247 = dma.vmem_to_hbm [thread:$0]  %s245_s6, 128, %s574_s2, [#allocation4]  }
 0x294   :  { %488 = dma.done.wait [#allocation4], 128  }
 0x295   :  { %489 = vsyncadd [#allocation4], 4294967168 }
 0x296   :  { %251 = vsyncpa [#allocation3], 1 }
 0x297   :  { %252 = vsyncpa [#allocation6], 1 }
 0x298   :  { %253 = vsyncpa [#allocation4], 1 }

</bundles_post_ra>
